<compile_context>
chip_gen: v7x
topology: tpu7x:2x2x1
jax: 0.10.0
libtpu: 0.0.40
codegen_flags: <defaults>
</compile_context>

<pallas_src>
import math

import jax
import jax.numpy as jnp
from jax import lax
from jax.experimental import pallas as pl
from jax.experimental.pallas import tpu as pltpu

_LANES = 128  # TPU lane width — batched phi count is padded to a multiple of this.


# ----------------------------------------------------------------- kernels ---

def _global_phase_kernel(phi_ref, out_ref):
    """Single-phi path.

    phi_ref: SMEM (1,) f32     — the scalar angle.
    out_ref: VMEM (1, 2) f32   — [[cos(phi), sin(phi)]].
    """
    # Lane-broadcast phi over the output block, then select cos/sin per lane.
    # Stays entirely on the VPU/EUP + one store; no concatenate / XLU traffic.
    theta = jnp.full(out_ref.shape, phi_ref[0], dtype=jnp.float32)
    col = lax.broadcasted_iota(jnp.int32, out_ref.shape, 1)
    out_ref[...] = jnp.where(col == 0, jnp.cos(theta), jnp.sin(theta))


def _global_phase_batched_kernel(phi_ref, out_ref):
    """Batched path — one launch for N phases.

    phi_ref: VMEM (1, N_pad) f32  — angles, lane-dense (N_pad % 128 == 0).
    out_ref: VMEM (2, N_pad) f32  — row 0 = cos(phi), row 1 = sin(phi).
    """
    theta = jnp.broadcast_to(phi_ref[...], out_ref.shape)      # (2, N_pad)
    row = lax.broadcasted_iota(jnp.int32, out_ref.shape, 0)    # sublane index
    out_ref[...] = jnp.where(row == 0, jnp.cos(theta), jnp.sin(theta))


# ---------------------------------------------------------------- wrappers ---

@jax.jit
def _phase_from_phi(phi: jax.Array) -> jax.Array:
    """exp(1j * phi[0]) as a complex64 scalar (use=True path)."""
    phi_s = phi.reshape(-1)[:1].astype(jnp.float32)  # (1,) — only phi[0] is used
    cs = pl.pallas_call(
        _global_phase_kernel,
        out_shape=jax.ShapeDtypeStruct((1, 2), jnp.float32),
        in_specs=[pl.BlockSpec(memory_space=pltpu.SMEM)],   # phi scalar in SMEM
        out_specs=pl.BlockSpec((1, 2), lambda: (0, 0)),     # fused [cos, sin]
    )(phi_s)
    # Glue: pack real/imag into complex64 (Pallas kernels can't emit complex refs).
    return lax.complex(cs[0, 0], cs[0, 1])


@jax.jit
def _phases_from_phis(phis: jax.Array) -> jax.Array:
    """exp(1j * phis) for a whole vector of angles in ONE lane-dense launch."""
    phis_f = phis.reshape(-1).astype(jnp.float32)
    n = phis_f.shape[0]
    n_pad = max(_LANES, ((n + _LANES - 1) // _LANES) * _LANES)
    padded = jnp.zeros((1, n_pad), jnp.float32).at[0, :n].set(phis_f)
    cs = pl.pallas_call(
        _global_phase_batched_kernel,
        out_shape=jax.ShapeDtypeStruct((2, n_pad), jnp.float32),
        in_specs=[pl.BlockSpec((1, n_pad), lambda: (0, 0))],
        out_specs=pl.BlockSpec((2, n_pad), lambda: (0, 0)),  # lane-dense [cos; sin]
    )(padded)
    return lax.complex(cs[0, :n], cs[1, :n])  # (n,) complex64


def global_phase(phi: jax.Array, use: bool = True) -> jax.Array:
    """Returns exp(1j * phi[0] * use) as a complex64 scalar.

    `use` must be a static Python bool (mirrors the PyTorch signature); when
    False no kernel is launched at all and the constant 1+0j is returned.
    """
    if not use:
        return jnp.asarray(1.0 + 0.0j, dtype=jnp.complex64)
    return _phase_from_phi(phi)


def global_phase_batched(phis: jax.Array) -> jax.Array:
    """exp(1j * phis) for N angles in a single launch (amortized-cost variant)."""
    return _phases_from_phis(phis)


# -------------------------------------------------------------------- main ---

if __name__ == "__main__":
    # Deterministic parameter init mirroring nn.Parameter(torch.rand(1) * 2*pi).
    key = jax.random.PRNGKey(0)
    k_phi, k_batch = jax.random.split(key)
    phi = jax.random.uniform(k_phi, (1,), dtype=jnp.float32) * (2.0 * math.pi)

    # Single-phase forward (the module's forward()).
    out_true = jax.block_until_ready(global_phase(phi, use=True))
    out_false = jax.block_until_ready(global_phase(phi, use=False))

    ref_true = jnp.exp(1j * phi[0]).astype(jnp.complex64)
    ref_false = jnp.asarray(1.0 + 0.0j, dtype=jnp.complex64)
    assert jnp.allclose(out_true, ref_true, atol=1e-5), (out_true, ref_true)
    assert jnp.allclose(out_false, ref_false, atol=1e-5), (out_false, ref_false)

    # Batched variant: many phases, one launch.
    phis = jax.random.uniform(k_batch, (8,), dtype=jnp.float32) * (2.0 * math.pi)
    out_batch = jax.block_until_ready(global_phase_batched(phis))
    ref_batch = jnp.exp(1j * phis).astype(jnp.complex64)
    assert out_batch.shape == (8,)
    assert jnp.allclose(out_batch, ref_batch, atol=1e-5), (out_batch, ref_batch)

    print("KERNEL_OK")
</pallas_src>

<mosaic_0001>
module attributes {stable_mosaic.version = 11 : i64} {
  func.func @_global_phase_kernel(%arg0: memref<1xf32, #tpu.memory_space<smem>>, %arg1: memref<1x2xf32, #tpu.memory_space<vmem>>) attributes {dimension_semantics = [], scalar_prefetch = 0 : i64, scratch_operands = 0 : i64, tpu.core_type = #tpu.core_type<tc>} {
    %c0 = arith.constant 0 : index
    %0 = memref.load %arg0[%c0] : memref<1xf32, #tpu.memory_space<smem>>
    %1 = vector.broadcast %0 : f32 to vector<1x2xf32>
    %2 = tpu.iota {dimensions = array<i32: 1>} : vector<1x2xi32>
    %c0_i32 = arith.constant 0 : i32
    %3 = vector.broadcast %c0_i32 : i32 to vector<1x2xi32>
    %4 = arith.cmpi eq, %2, %3 : vector<1x2xi32>
    %5 = math.cos %1 : vector<1x2xf32>
    %6 = math.sin %1 : vector<1x2xf32>
    %7 = arith.select %4, %5, %6 : vector<1x2xi1>, vector<1x2xf32>
    %c0_0 = arith.constant 0 : index
    %c0_1 = arith.constant 0 : index
    %8 = vector.load %arg1[%c0_0, %c0_1] : memref<1x2xf32, #tpu.memory_space<vmem>>, vector<1x2xf32>
    tpu.vector_store %arg1[%c0_0, %c0_1], %7 {strides = array<i32>} : memref<1x2xf32, #tpu.memory_space<vmem>>, vector<1x2xf32>,
    return
  }
}

</mosaic_0001>

<bundles_post_ra>
// kernel: custom-call
= control target key start
LH: loop header
LB: loop body
LE: loop exit
PB: predicated region body
PF: predicated region fallthrough
CT: control target
= control target key end

     0   :  { %vm5_vm0 = vcmask 1040384   ;;  %s138_s0 = inlined_call_operand.<no memory space> [shape: f32[], index: 0, kind: input, shape index: {}]   ;;  %s139_s1 = inlined_call_operand.<no memory space> [shape: f32[], index: 1, kind: input, shape index: {}]   ;;  %s140_s2 = inlined_call_operand.hbm [shape: c64[], index: 2, kind: output, shape index: {}]  }
   0x1   :  { %s97_s11 = scalar_lea.hbm %s140_s2, 16  ;;  %v4_v0 = vstv %s138_s0 }
   0x2   :  { %6 = vst.msk [vmem:[#allocation0] sm:$0xff] %vm5_vm0, %v4_v0 }
   0x3   :  { %7 = vsyncpa [#allocation1], 0  ;;  %s77_s14 = smov [#allocation0]  }
   0x4   :  { %s8_s15 = sshll.u32 %s77_s14, 4  ;;  %s9_s15 = int_to_ptr.vmem [resolvable:$true] %s8_s15 }
   0x5   :  { %s26_s16 = scalar_lea.vmem %s9_s15, 16  ;;  %s30_s17 = scalar_lea.vmem %s9_s15, 128 }
   0x6   :  { %p27_p0 = scmp.ne.s32.totalorder %s9_s15, %s26_s16  ;;  %p31_p1 = scmp.lt.s32.totalorder %s9_s15, %s9_s15 }
   0x7   :  { %p32_p2 = scmp.lt.s32.totalorder %s30_s17, %s26_s16 }
   0x9   :  { %p33_p3 = por %p32_p2, %p31_p1 }
   0xb   :  { %p34_p4 = pnand %p33_p3, %p27_p0 }
   0xd   :  { %37 = shalt.err (!%p34_p4)  }
   0xe   :  { %p39_p5 = scmp.ne.s32.totalorder %s140_s2, %s97_s11  ;;  %s40_s21 = scalar_lea.hbm %s140_s2, 32 }
   0xf   :  { %p41_p6 = scmp.lt.u32.totalorder %s40_s21, %s97_s11  ;;  %p42_p7 = scmp.lt.u32.totalorder %s97_s11, %s140_s2 }
  0x11   :  { %p43_p8 = por %p42_p7, %p41_p6 }
  0x13   :  { %p44_p9 = pnand %p43_p8, %p39_p5 }
  0x15   :  { %47 = shalt.err (!%p44_p9)  }
  0x16   :  { %11 = dma.vmem_to_hbm [thread:$0]  %s9_s15, 16, %s140_s2, [#allocation1] }
  0x17   :  { %73 = dma.done.wait [#allocation1], 16  }
  0x18   :  { %74 = vsyncadd [#allocation1], 4294967280 }
  0x19   :  { %13 = vsyncpa [#allocation1], 1  ;;  %v14_v1 = vstv %s139_s1 }
  0x1a   :  { %16 = vst.msk [vmem:[#allocation2] sm:$0xff] %vm5_vm0, %v14_v1 }
  0x1b   :  { %17 = vsyncpa [#allocation3], 0  ;;  %s78_s30 = smov [#allocation2]  }
  0x1c   :  { %s18_s3 = sshll.u32 %s78_s30, 4  ;;  %s19_s3 = int_to_ptr.vmem [resolvable:$true] %s18_s3 }
  0x1d   :  { %s48_s4 = scalar_lea.vmem %s19_s3, 16  ;;  %s52_s5 = scalar_lea.vmem %s19_s3, 128 }
  0x1e   :  { %p49_p10 = scmp.ne.s32.totalorder %s19_s3, %s48_s4  ;;  %p53_p11 = scmp.lt.s32.totalorder %s19_s3, %s19_s3 }
  0x1f   :  { %p54_p12 = scmp.lt.s32.totalorder %s52_s5, %s48_s4 }
  0x21   :  { %p55_p13 = por %p54_p12, %p53_p11 }
  0x23   :  { %p56_p0 = pnand %p55_p13, %p49_p10 }
  0x25   :  { %59 = shalt.err (!%p56_p0)  }
  0x26   :  { %p61_p1 = scmp.ne.s32.totalorder %s97_s11, %s40_s21  ;;  %p64_p2 = scmp.lt.u32.totalorder %s40_s21, %s40_s21 }
  0x28   :  { %p65_p3 = por %p64_p2, %p42_p7 }
  0x2a   :  { %p67_p4 = por %p65_p3, %p41_p6 }
  0x2c   :  { %p68_p5 = pnand %p67_p4, %p61_p1 }
  0x2e   :  { %71 = shalt.err (!%p68_p5)  }
  0x2f   :  { %21 = dma.vmem_to_hbm [thread:$0]  %s19_s3, 16, %s97_s11, [#allocation3] }
  0x30   :  { %75 = dma.done.wait [#allocation3], 16  }
  0x31   :  { %76 = vsyncadd [#allocation3], 4294967280 }
  0x32   :  { %23 = vsyncpa [#allocation3], 1 }

// kernel: _phase_from_phi.1
= control target key start
LH: loop header
LB: loop body
LE: loop exit
PB: predicated region body
PF: predicated region fallthrough
CT: control target
= control target key end

     0   :  { %v250_v12 = vmov 683565275   ;;  %v251_v14 = vmov 2475754826   ;;  %v252_v16 = vmov 2131351028   ;;  %s293_s0 = inlined_call_operand.<no memory space> [shape: f32[1], index: 0, kind: input, shape index: {}]   ;;  %s294_s1 = inlined_call_operand.vmem [shape: f32[1,2], index: 1, kind: output, shape index: {}]  }
   0x1   :  { %v269_v0 = vstv %s293_s0  ;;  %v253_v18 = vmov 2102212464   ;;  %v254_v20 = vmov 920167782   ;;  %v255_v27 = vmov 1326507024  }
   0x2   :  { %v17_v1 = vand.u32 2139095040, %v269_v0  ;;  %v14_v3 = vand.u32 2147483647, %v269_v0  ;;  %vm16_vm7 = vcmp.lt.s32.totalorder %v269_v0, 0  ;;  %vm106_vm15 = vweird.f32 %v269_v0 }
   0x4   :  { %v18_v2 = vshrl.u32 %v17_v1, 23  ;;  %v21_v6 = vand.u32 8388607, %v14_v3  ;;  %vm15_vm8 = vcmp.le.f32.partialorder %v14_v3, 0.7853982 }
   0x6   :  { %v228_v4 = vadd.s32 4294967169, %v18_v2  ;;  %v22_v9 = vor.u32 8388608, %v21_v6 }
   0x8   :  { %v24_v5 = vadd.s32 1, %v228_v4  ;;  %v62_v29 = vshll.u32 %v22_v9, 8 }
   0xa   :  { %vm25_vm0 = vcmp.gt.s32.totalorder %v24_v5, 0 }
   0xb   :  { %v26_v7 = vsel %vm25_vm0, %v24_v5, 0 }
   0xc   :  { %v28_v8 = vand.u32 31, %v26_v7  ;;  %v27_v10 = vshrl.u32 %v26_v7, 5 }
   0xe   :  { %v29_v11 = vsub.s32 32, %v28_v8  ;;  %v31_v13 = vshll.u32 %v250_v12, %v28_v8  ;;  %v34_v15 = vshll.u32 %v251_v14, %v28_v8  ;;  %v37_v17 = vshll.u32 %v252_v16, %v28_v8 }
   0xf   :  { %v40_v19 = vshll.u32 %v253_v18, %v28_v8  ;;  %v43_v21 = vshll.u32 %v254_v20, %v28_v8  ;;  %vm46_vm1 = vcmp.lt.s32.totalorder %v27_v10, 1  ;;  %vm49_vm2 = vcmp.lt.s32.totalorder %v27_v10, 4 }
  0x10   :  { %v30_v22 = vshrl.u32 %v250_v12, %v29_v11  ;;  %v32_v23 = vshrl.u32 %v251_v14, %v29_v11  ;;  %v35_v24 = vshrl.u32 %v252_v16, %v29_v11  ;;  %v38_v25 = vshrl.u32 %v253_v18, %v29_v11 }
  0x11   :  { %v41_v26 = vshrl.u32 %v254_v20, %v29_v11  ;;  %v44_v28 = vshrl.u32 %v255_v27, %v29_v11  ;;  %vm47_vm3 = vcmp.lt.s32.totalorder %v27_v10, 2  ;;  %vm48_vm4 = vcmp.lt.s32.totalorder %v27_v10, 3 }
  0x12   :  { %v33_v30 = vor.u32 %v32_v23, %v31_v13  ;;  %v36_v31 = vor.u32 %v35_v24, %v34_v15  ;;  %v39_v32 = vor.u32 %v38_v25, %v37_v17 }
  0x13   :  { %v42_v33 = vor.u32 %v41_v26, %v40_v19  ;;  %v45_v34 = vor.u32 %v44_v28, %v43_v21  ;;  %v11_v21 = vlaneseq }
  0x14   :  { %v50_v35 = vsel %vm46_vm1, %v30_v22, %v33_v30  ;;  %v51_v36 = vsel %vm49_vm2, %v39_v32, 2102212464  ;;  %v54_v37 = vsel %vm46_vm1, %v33_v30, %v36_v31  ;;  %v58_v38 = vsel %vm46_vm1, %v36_v31, %v39_v32 }
  0x15   :  { %v52_v39 = vsel %vm48_vm4, %v36_v31, %v51_v36  ;;  %v55_v40 = vsel %vm49_vm2, %v42_v33, 920167782  ;;  %v59_v41 = vsel %vm49_vm2, %v45_v34, 1326507024  ;;  %v12_v25 = vand.u32 127, %v11_v21 }
  0x16   :  { %v56_v42 = vsel %vm48_vm4, %v39_v32, %v55_v40  ;;  %v60_v43 = vsel %vm48_vm4, %v42_v33, %v59_v41  ;;  %v53_v44 = vsel %vm47_vm3, %v50_v35, %v52_v39  ;;  %vm222_vm1 = vcmask 8192  }
  0x17   :  { %v57_v45 = vsel %vm47_vm3, %v54_v37, %v56_v42  ;;  %v61_v46 = vsel %vm47_vm3, %v58_v38, %v60_v43  ;;  %v69_v51 = vmul.u32 %v62_v29, %v53_v44  ;;  %vm13_vm0 = vcmp.eq.s32.totalorder %v12_v25, 0 }
  0x18   :  { %v275_v47 = vmul.u32.u64.low %v62_v29, %v61_v46  ;;  %v276_v48 = vmul.u32.u64.high %v62_v29, %v61_v46, %v275_v47  ;;  %v278_v49 = vmul.u32.u64.low %v62_v29, %v57_v45  ;;  %v279_v50 = vmul.u32.u64.high %v62_v29, %v57_v45, %v278_v49 }
  0x1a   :  { %vm71_vm5 = vc.u32 %v276_v48, %v278_v49  ;;  %v72_v52 = vadd.s32 1, %v279_v50  ;;  %v70_v63 = vadd.s32 %v278_v49, %v276_v48 }
  0x1c   :  { %v73_v53 = vsel %vm71_vm5, %v72_v52, %v279_v50 }
  0x1d   :  { %v74_v54 = vadd.s32 %v73_v53, %v69_v51 }
  0x1f   :  { %v75_v55 = vadd.s32 536870912, %v74_v54 }
  0x21   :  { %v76_v56 = vshrl.u32 %v75_v55, 30 }
  0x23   :  { %v77_v57 = vshll.u32 %v76_v56, 30  ;;  %v100_v13 = vsub.s32 4, %v76_v56 }
  0x25   :  { %v78_v58 = vsub.s32 %v74_v54, %v77_v57  ;;  %v101_v16 = vsel %vm16_vm7, %v100_v13, %v76_v56 }
  0x26   :  { %v103_v19 = vsel %vm15_vm8, 0, %v101_v16 }
  0x27   :  { %v80_v59 = vsub.s32 0, %v78_v58  ;;  %v210_v20 = vadd.s32 3, %v103_v19  ;;  %v107_v22 = vand.u32 3, %v103_v19 }
  0x29   :  { %v229_v60 = vmin.u32 %v80_v59, %v78_v58  ;;  %v211_v23 = vand.u32 3, %v210_v20  ;;  %vm112_vm9 = vcmp.eq.s32.totalorder %v107_v22, 2  ;;  %vm109_vm11 = vcmp.eq.s32.totalorder %v107_v22, 0 }
  0x2a   :  { %vm108_vm13 = vcmp.lt.s32.totalorder %v107_v22, 2 }
  0x2b   :  { %v82_v61 = vclz %v229_v60  ;;  %vm216_vm10 = vcmp.eq.s32.totalorder %v211_v23, 2  ;;  %vm213_vm12 = vcmp.eq.s32.totalorder %v211_v23, 0  ;;  %vm212_vm14 = vcmp.lt.s32.totalorder %v211_v23, 2 }
  0x2d   :  { %v230_v62 = vadd.s32 4294967294, %v82_v61 }
  0x2f   :  { %vm231_vm6 = vcmp.lt.s32.totalorder %v230_v62, 0 }
  0x30   :  { %v85_v1 = vsel %vm231_vm6, 0, %v230_v62 }
  0x31   :  { %v86_v2 = vsub.s32 32, %v85_v1  ;;  %v87_v4 = vshll.u32 %v78_v58, %v85_v1  ;;  %v90_v5 = vsub.s32 4294967266, %v85_v1 }
  0x33   :  { %v88_v6 = vshrl.u32 %v70_v63, %v86_v2  ;;  %v91_v7 = vadd.s32 127, %v90_v5 }
  0x35   :  { %v89_v8 = vor.u32 %v88_v6, %v87_v4  ;;  %v92_v9 = vshll.u32 %v91_v7, 23 }
  0x37   :  { %v93_v10 = vor.u32 4788187, %v92_v9  ;;  %v96_v11 = vcvt.s32.f32 %v89_v8 }
  0x39   :  { %v94_v12 = vand.u32 2147483647, %v93_v10 }
  0x3b   :  { %v97_v14 = vmul.f32 %v96_v11, %v94_v12 }
  0x3d   :  { %v98_v15 = vxor.u32 2147483648, %v97_v14 }
  0x3f   :  { %v99_v17 = vsel %vm16_vm7, %v98_v15, %v97_v14 }
  0x40   :  { %v102_v18 = vsel %vm15_vm8, %v269_v0, %v99_v17 }
  0x41   :  { %246 = vcosq.f32 %v102_v18 }
  0x42   :  { %248 = vsinq.f32 %v102_v18 }
  0x4b   :  { %v247_v24 = vpop.eup %246 }
  0x4c   :  { %v249_v26 = vpop.eup %248  ;;  %v113_v27 = vxor.u32 2147483648, %v247_v24 }
  0x4d   :  { %v110_v3 = vxor.u32 2147483648, %v249_v26 }
  0x4e   :  { %v114_v28 = vsel %vm112_vm9, %v113_v27, %v249_v26  ;;  %v218_v29 = vsel %vm216_vm10, %v113_v27, %v249_v26 }
  0x4f   :  { %v111_v30 = vsel %vm109_vm11, %v247_v24, %v110_v3  ;;  %v215_v31 = vsel %vm213_vm12, %v247_v24, %v110_v3 }
  0x50   :  { %v115_v32 = vsel %vm108_vm13, %v111_v30, %v114_v28  ;;  %v219_v33 = vsel %vm212_vm14, %v215_v31, %v218_v29 }
  0x51   :  { %v116_v34 = vsel %vm106_vm15, nan, %v115_v32  ;;  %v220_v35 = vsel %vm106_vm15, nan, %v219_v33 }
  0x52   :  { %v221_v36 = vsel %vm13_vm0, %v116_v34, %v220_v35 }
  0x53   :  { %223 = vst.msk [vmem:[%s294_s1] sm:$0x1] %vm222_vm1, %v221_v36 }

</bundles_post_ra>
